<compile_context>
chip_gen: v7x
topology: tpu7x:2x2x1
jax: 0.10.0
libtpu: 0.0.40
codegen_flags: <defaults>
</compile_context>

<pallas_src>
import functools

import jax
import jax.numpy as jnp
from jax.experimental import pallas as pl
from jax.experimental.pallas import tpu as pltpu


def _round_up(a: int, m: int) -> int:
    return (a + m - 1) // m * m


def _conv1d_relu_kernel(w_ref, b_ref, x_ref, o_ref):
    # w_ref: (Cout, K*Cin_p)   -- VMEM-resident flattened weights
    # b_ref: (Cout, 1)         -- VMEM-resident bias
    # x_ref: (1, K*Cin_p, TL)  -- input tile (conv taps stacked on the channel axis)
    # o_ref: (1, Cout, TL)     -- output tile, already in NCL layout
    acc = jnp.dot(w_ref[...], x_ref[0], preferred_element_type=jnp.float32)
    acc = acc + b_ref[...]                      # broadcast bias over lanes
    o_ref[0] = jnp.maximum(acc, 0.0).astype(o_ref.dtype)


@functools.partial(jax.jit, static_argnames=("padding", "stride", "tl"))
def down_block1d(x, w, b, *, padding, stride=2, tl=128):
    """x: (N, Cin, L) f32; w: (Cout, Cin, K); b: (Cout,). Returns (N, Cout, L_out)."""
    N, Cin, L = x.shape
    Cout, _, K = w.shape
    L_out = (L + 2 * padding - K) // stride + 1

    # --- alignment padding ---
    L_out_p = _round_up(L_out, tl)          # lane-dense, tile-aligned output length
    Cin_p = _round_up(Cin, 8)               # f32 sublane multiple for the reduction dim
    L_need = (L_out_p - 1) * stride + K     # padded input length covering every tap

    # Pad channels (zeros contribute 0 to the dot) and the conv/left padding,
    # then extend/trim on the right so every strided tap is in range.
    x_pad = jnp.pad(x, ((0, 0), (0, Cin_p - Cin), (padding, 0)))
    cur = L + padding
    if cur < L_need:
        x_pad = jnp.pad(x_pad, ((0, 0), (0, 0), (0, L_need - cur)))
    else:
        x_pad = x_pad[:, :, :L_need]

    # K phase-shifted, stride-downsampled taps (pure strided slices, no gather):
    #   taps[k][n, c, l] = x_pad[n, c, stride*l + k]
    taps = [x_pad[:, :, k::stride][:, :, :L_out_p] for k in range(K)]
    x_taps = jnp.stack(taps, axis=1).reshape(N, K * Cin_p, L_out_p)

    # Weights: (Cout, Cin, K) -> (Cout, K, Cin_p) -> (Cout, K*Cin_p) to match x_taps.
    w_p = jnp.pad(w, ((0, 0), (0, Cin_p - Cin), (0, 0)))
    w_flat = jnp.transpose(w_p, (0, 2, 1)).reshape(Cout, K * Cin_p)
    b_col = b.reshape(Cout, 1)

    n_l_tiles = L_out_p // tl
    out = pl.pallas_call(
        _conv1d_relu_kernel,
        out_shape=jax.ShapeDtypeStruct((N, Cout, L_out_p), x.dtype),
        grid=(N, n_l_tiles),
        in_specs=[
            pl.BlockSpec((Cout, K * Cin_p), lambda n, l: (0, 0)),   # resident weights
            pl.BlockSpec((Cout, 1), lambda n, l: (0, 0)),           # resident bias
            pl.BlockSpec((1, K * Cin_p, tl), lambda n, l: (n, 0, l)),
        ],
        out_specs=pl.BlockSpec((1, Cout, tl), lambda n, l: (n, 0, l)),
        compiler_params=pltpu.CompilerParams(
            dimension_semantics=("parallel", "parallel")),
    )(w_flat, b_col, x_taps)

    # Only trim the lane padding; layout is already NCL.
    return out[:, :, :L_out]


def _reference(x, w, b, *, padding, stride=2):
    out = jax.lax.conv_general_dilated(
        x, w,
        window_strides=(stride,),
        padding=[(padding, padding)],
        dimension_numbers=("NCH", "OIH", "NCH"),
    )
    out = out + b[None, :, None]
    return jnp.maximum(out, 0.0)


if __name__ == "__main__":
    # Module config: DownBlock1d(in_features=4, out_features=8, kernel_size=3, padding=1)
    N, Cin, L = 2, 4, 16
    Cout, K, padding = 8, 3, 1

    key = jax.random.PRNGKey(0)
    kx, kw, kb = jax.random.split(key, 3)

    x = jax.random.normal(kx, (N, Cin, L), dtype=jnp.float32)
    # PyTorch Conv1d init scheme (uniform +/- 1/sqrt(fan_in)), deterministic
    bound = 1.0 / jnp.sqrt(jnp.float32(Cin * K))
    w = jax.random.uniform(kw, (Cout, Cin, K), dtype=jnp.float32,
                           minval=-bound, maxval=bound)
    b = jax.random.uniform(kb, (Cout,), dtype=jnp.float32,
                           minval=-bound, maxval=bound)

    out = down_block1d(x, w, b, padding=padding, stride=2)
    out = jax.block_until_ready(out)

    ref = _reference(x, w, b, padding=padding, stride=2)
    assert out.shape == ref.shape, (out.shape, ref.shape)
    assert jnp.allclose(out, ref, atol=1e-5, rtol=1e-5), "mismatch vs reference"

    print("KERNEL_OK")
</pallas_src>

<mosaic_0001>
module attributes {stable_mosaic.version = 11 : i64} {
  func.func @_conv1d_relu_kernel(%arg0: i32, %arg1: i32, %arg2: memref<8x24xf32, #tpu.memory_space<vmem>>, %arg3: memref<8x1xf32, #tpu.memory_space<vmem>>, %arg4: memref<1x24x128xf32, #tpu.memory_space<vmem>>, %arg5: memref<1x8x128xf32, #tpu.memory_space<vmem>>) attributes {dimension_semantics = [#tpu.dimension_semantics<parallel>, #tpu.dimension_semantics<parallel>], iteration_bounds = array<i64: 2, 1>, scalar_prefetch = 0 : i64, scratch_operands = 0 : i64, tpu.core_type = #tpu.core_type<tc>, window_params = [{pipeline_mode = #tpu.pipeline_mode<synchronous>, transform_indices = @transform_0, window_bounds = array<i64: 8, 24>}, {pipeline_mode = #tpu.pipeline_mode<synchronous>, transform_indices = @transform_1, window_bounds = array<i64: 8, 1>}, {transform_indices = @transform_2, window_bounds = array<i64: 1, 24, 128>}, {transform_indices = @transform_3, window_bounds = array<i64: 1, 8, 128>}]} {
    %c0 = arith.constant 0 : index
    %c0_0 = arith.constant 0 : index
    %0 = vector.load %arg2[%c0, %c0_0] : memref<8x24xf32, #tpu.memory_space<vmem>>, vector<8x24xf32>
    %c0_1 = arith.constant 0 : index
    %c0_2 = arith.constant 0 : index
    %c0_3 = arith.constant 0 : index
    %1 = vector.load %arg4[%c0_1, %c0_2, %c0_3] : memref<1x24x128xf32, #tpu.memory_space<vmem>>, vector<1x24x128xf32>
    %2 = vector.shape_cast %1 : vector<1x24x128xf32> to vector<24x128xf32>
    %cst = arith.constant dense<0.000000e+00> : vector<8x128xf32>
    %3 = tpu.matmul %0, %2, %cst {dimension_numbers = #tpu.dot_dimension_numbers<[1], [0], [0], [1], [0, 0, 1, 1], [], []>} : vector<8x24xf32>, vector<24x128xf32>, vector<8x128xf32> -> vector<8x128xf32>
    %c0_4 = arith.constant 0 : index
    %c0_5 = arith.constant 0 : index
    %4 = vector.load %arg3[%c0_4, %c0_5] : memref<8x1xf32, #tpu.memory_space<vmem>>, vector<8x1xf32>
    %5 = vector.broadcast %4 : vector<8x1xf32> to vector<8x128xf32>
    %6 = arith.addf %3, %5 : vector<8x128xf32>
    %cst_6 = arith.constant 0.000000e+00 : f32
    %7 = vector.broadcast %cst_6 : f32 to vector<8x128xf32>
    %8 = arith.maximumf %6, %7 : vector<8x128xf32>
    %c0_7 = arith.constant 0 : index
    %c0_8 = arith.constant 0 : index
    %c0_9 = arith.constant 0 : index
    %9 = vector.load %arg5[%c0_7, %c0_8, %c0_9] : memref<1x8x128xf32, #tpu.memory_space<vmem>>, vector<1x8x128xf32>
    %10 = vector.shape_cast %9 : vector<1x8x128xf32> to vector<8x128xf32>
    %11 = vector.shape_cast %8 : vector<8x128xf32> to vector<1x8x128xf32>
    tpu.vector_store %arg5[%c0_7, %c0_8, %c0_9], %11 {strides = array<i32>} : memref<1x8x128xf32, #tpu.memory_space<vmem>>, vector<1x8x128xf32>,
    return
  }
  func.func @transform_0(%arg0: i32, %arg1: i32) -> (i32, i32) {
    %c0_i32 = arith.constant 0 : i32
    %c0_i32_0 = arith.constant 0 : i32
    %c0_i32_1 = arith.constant 0 : i32
    return %c0_i32, %c0_i32_0 : i32, i32
  }
  func.func @transform_1(%arg0: i32, %arg1: i32) -> (i32, i32) {
    %c0_i32 = arith.constant 0 : i32
    %c0_i32_0 = arith.constant 0 : i32
    %c0_i32_1 = arith.constant 0 : i32
    return %c0_i32, %c0_i32_0 : i32, i32
  }
  func.func @transform_2(%arg0: i32, %arg1: i32) -> (i32, i32, i32) {
    %c0_i32 = arith.constant 0 : i32
    %c0_i32_0 = arith.constant 0 : i32
    return %arg0, %c0_i32, %arg1 : i32, i32, i32
  }
  func.func @transform_3(%arg0: i32, %arg1: i32) -> (i32, i32, i32) {
    %c0_i32 = arith.constant 0 : i32
    %c0_i32_0 = arith.constant 0 : i32
    return %arg0, %c0_i32, %arg1 : i32, i32, i32
  }
}

</mosaic_0001>

<bundles_post_ra>
// kernel: down_block1d.1
= control target key start
LH: loop header
LB: loop body
LE: loop exit
PB: predicated region body
PF: predicated region fallthrough
CT: control target
= control target key end

     0   :  { %8 = vsyncpa [#allocation3], 0  ;;  %s681_s0 = inlined_call_operand.vmem [shape: f32[8,24], index: 0, kind: input, shape index: {}]   ;;  %s682_s1 = inlined_call_operand.vmem [shape: f32[8,1], index: 1, kind: input, shape index: {}]   ;;  %s683_s2 = inlined_call_operand.vmem [shape: f32[2,24,128], index: 2, kind: input, shape index: {}]   ;;  %s684_s3 = inlined_call_operand.hbm [shape: f32[2,8,128], index: 3, kind: output, shape index: {}]  }
   0x1   :  { %10 = vsyncpa [#allocation3 + $0x1], 0  ;;  %s563_s12 = smov 0   ;;  %s565_s13 = smov 0  }
   0x2   :  { %s567_s14 = smov 0   ;;  %s569_s15 = smov 0  }
   0x3   :  { %s571_s16 = smov 0   ;;  %s573_s17 = smov 0  }
   0x4 LB: > { %s369_s18 = sadd.s32 4294967295, %s536_s17   ;;  %s370_s19 = sadd.s32 4294967294, %s536_s17   ;;  %s536_s17 = sphi %s573_s17, %s16_s17   ;;  %s532_s16 = sphi %s571_s16, %s691_s16   ;;  %s528_s15 = sphi %s569_s15, %s690_s15   ;;  %s524_s14 = sphi %s567_s14, %s689_s14   ;;  %s520_s13 = sphi %s565_s13, %s688_s13   ;;  %s516_s12 = sphi %s563_s12, %s687_s12  }
   0x5   : > { %s28_s20 = sadd.s32 1, %s532_s16  ;;  %s107_s21 = sadd.s32 1, %s524_s14 }
   0x6   : > { %p30_p0 = scmp.ge.s32.totalorder %s28_s20, 2  ;;  %p117_p1 = scmp.ne.s32.totalorder %s524_s14, %s520_s13 }
   0x7   : > { %p118_p2 = scmp.eq.s32.totalorder %s369_s18, 1  ;;  %p123_p3 = scmp.ne.s32.totalorder %s520_s13, %s516_s12 }
   0x8   : > { %s693_s20 = smov (%p30_p0, %s28_s20), 0  ;;  %p124_p5 = scmp.eq.s32.totalorder %s370_s19, 1 }
   0x9   : > { %p603_p4 = por %p118_p2, %p117_p1  ;;  %s102_s23 = ssub.s32 %s532_s16, %s693_s20 }
   0xa   : > { %p373_p6 = scmp.ge.s32.totalorder %s536_s17, 1  ;;  %p105_p7 = scmp.eq.s32.totalorder %s102_s23, 0 }
   0xb   : > { %p610_p8 = por %p124_p5, %p123_p3  ;;  %p159_p9 = scmp.lt.s32.totalorder %s536_s17, 3 }
   0xc   : > { %s616_s25 = scalar_select %p105_p7, %s524_s14, %s107_s21  }
   0xd   : > { %p160_p10 = pnand %p373_p6, %p159_p9 }
   0xe   : > { %p186_p11 = scmp.lt.s32.totalorder (!%p160_p10), %s528_s15, 1  ;;  %v538_v0 = vmov (!%p160_p10), 0.0|0.0   ;;  %vm539_vm0 = vmmov (!%p160_p10), 0   ;;  %v540_v1 = vmov (!%p160_p10), 0.0   ;;  %v198_v2 = vld [vmem:[%s682_s1] sm:$0xff] (!%p160_p10)  ;;  %v541_v3 = vmov (!%p160_p10), 0  }
   0xf   : > { %163 = sbr.rel (%p160_p10) target bundleno = 265 (0x109), region = 32  ;;  %394 = vmatprep.subr.bf16.mxu0 (!%p160_p10), %v538_v0  ;;  %391 = vmatprep.mubr.msk.f32.mxu0 (!%p160_p10), %vm539_vm0, %v540_v1  ;;  %v194_v8 = vld [vmem:[%s681_s0] sm:$0xff] (!%p160_p10)  ;;  %vm204_vm1 = vcmask (!%p160_p10), 195584   ;;  %s183_s8 = sand.u32 (!%p160_p10), 1, %s520_s13  }
  0x10   : > { %457 = vset.pattern.permute.xlu0 (!%p160_p10), %v541_v3  ;;  %s374_s9 = sshll.u32 (!%p160_p10), %s183_s8, 3  ;;  %s378_s10 = sshll.u32 (!%p160_p10), %s528_s15, 7 }
  0x11   : > { %201 = vperm.xlu0 (!%p160_p10), %457, %v198_v2   ;;  %s185_s11 = scalar_lea.vmem (!%p160_p10), [#allocation2], %s374_s9  ;;  %s634_s23 = scalar_lea.hbm (!%p160_p10), %s684_s3, %s378_s10 }
  0x12   : > { %s295_s18 = sshll.u32 (!%p160_p10), %s185_s11, 4  ;;  %s281_s26 = scalar_lea.sflag (!%p160_p10), [#allocation3], %s183_s8  ;;  %s636_s18 = int_to_ptr.vmem [resolvable:$true] %s295_s18 }
  0x13   : > { %s458_s27 = scalar_lea.vmem (!%p160_p10), %s636_s18, 128 }
  0x14   : > { %p459_p12 = scmp.ne.s32.totalorder (!%p160_p10), %s636_s18, %s458_s27 }
  0x16   : > { %s187_s28 = scalar_select %p186_p11, %s528_s15, 1 }
  0x17   : > { %p460_p13 = pnand %p459_p12, %p603_p4  ;;  %s542_s15 = smov [#allocation2]  }
  0x18   : > { %s397_s29 = smul.u32 24, %s187_s28  ;;  %s462_s28 = sshll.u32 %s542_s15, 4  ;;  %s463_s28 = int_to_ptr.vmem [resolvable:$false] %s462_s28 }
  0x19   : > { %p461_p0 = pneg %p460_p13  ;;  %p465_p1 = scmp.lt.s32.totalorder %s636_s18, %s463_s28 }
  0x1a   : > { %s193_s5 = scalar_lea.vmem %s683_s2, %s397_s29  ;;  %s464_s29 = scalar_lea.vmem %s463_s28, 256 }
  0x1b   : > { %v195_v4 = vld [vmem:[%s193_s5] sm:$0xff]  ;;  %v196_v5 = vld [vmem:[%s193_s5 + $0x8] sm:$0xff]  ;;  %v197_v7 = vld [vmem:[%s193_s5 + $0x10] sm:$0xff]  ;;  %p466_p2 = scmp.lt.s32.totalorder %s464_s29, %s458_s27 }
  0x1c   : > { %v395_v6 = vpack.c.bf16 %v196_v5, %v195_v4 }
  0x1d   : > { %p467_p3 = por %p466_p2, %p465_p1 }
  0x1e   : > { %396 = vmatpush3.bf16.msra.mxu0 %v395_v6 }
  0x1f   : > { %389 = vmatprep.subr.mxu0 %v540_v1  ;;  %p468_p5 = pnand %p467_p3, %p461_p0 }
  0x22   : > { %390 = vmatpush3.msra.mxu0 %v197_v7 }
  0x23   : > { %392 = vmatmul.mubr.msk.f32.vlgmr.msra.gmra.mrb[0].mxu0 %vm204_vm1, %v194_v8 }
  0x90   : > { %v202_v9 = vpop.permute.xlu0 %201 }
  0xf6   : > { %v274_v10 = vpop.f32.mrb[0].mxu0 }
  0xf7   : > { %v275_v11 = vadd.f32 %v274_v10, %v202_v9  ;;  %v393_v12 = vpop.f32.mrb[1].mxu0 }
  0xf9   : > { %v278_v13 = vmax.f32 %v275_v11, 0.0 }
  0xfb   : > { %279 = vst [vmem:[%s185_s11] sm:$0xff] %v278_v13 }
  0xfc   : > { %471 = shalt.err (!%p468_p5)
}
  0xfd   : > { %s472_s30 = scalar_lea.hbm %s634_s23, 128  ;;  %s476_s6 = scalar_lea.hbm %s684_s3, 256 }
  0xfe   : > { %p473_p6 = scmp.ne.s32.totalorder %s634_s23, %s472_s30  ;;  %p477_p10 = scmp.lt.u32.totalorder %s634_s23, %s684_s3 }
  0xff   : > { %p478_p11 = scmp.lt.u32.totalorder %s476_s6, %s472_s30  ;;  %p480_p13 = scmp.lt.u32.totalorder %s472_s30, %s634_s23 }
 0x100   : > { %p474_p7 = pnand %p473_p6, %p603_p4 }
 0x101   : > { %p479_p12 = por %p478_p11, %p477_p10 }
 0x102   : > { %p475_p9 = pneg %p474_p7 }
 0x103   : > { %p481_p0 = por %p480_p13, %p479_p12 }
 0x105   : > { %p482_p1 = pnand %p481_p0, %p475_p9 }
 0x107   : > { %485 = shalt.err (!%p482_p1)
}
 0x108   : > { %398 = dma.vmem_to_hbm [thread:$0]  (%p603_p4), %s636_s18, 128, %s634_s23, %s281_s26  }
 0x109 PF: > { %p404_p2 = scmp.ge.s32.totalorder %s536_s17, 2  ;;  %s307_s9 = sand.u32 1, %s516_s12  }
 0x10a   : > { %s308_s10 = scalar_lea.sflag [#allocation3], %s307_s9 }
 0x10b   : > { %p401_p3 = pnand %p404_p2, %p610_p8 }
 0x10d   : > { %511 = dma.done.wait (!%p401_p3), %s308_s10, 128  }
 0x10e   : > { %513 = vsyncadd (!%p401_p3), %s308_s10, 4294967168  ;;  %s16_s17 = sadd.s32 1, %s536_s17   ;;  %s687_s12 = smov %s520_s13 }
 0x10f   : > { %p13_p5 = scmp.ge.s32.totalorder %s16_s17, 4   ;;  %s688_s13 = smov %s524_s14 }
 0x110   : > { %s689_s14 = smov %s616_s25  ;;  %s690_s15 = smov %s532_s16 }
 0x111   : > { %s691_s16 = smov %s693_s20  ;;  %15 = sbr.rel (!%p13_p5) target bundleno = 4 (0x4), region = 67 }
 0x118   :  { %313 = vsyncpa [#allocation3], 1 }
 0x119   :  { %315 = vsyncpa [#allocation3 + $0x1], 1 }

</bundles_post_ra>
